<compile_context>
chip_gen: v7x
topology: tpu7x:2x2x1
jax: 0.10.0
libtpu: 0.0.40
codegen_flags: <defaults>
</compile_context>

<pallas_src>
import jax
import jax.numpy as jnp
from jax.experimental import pallas as pl
from jax.experimental.pallas import tpu as pltpu


def _fast_self_attention_kernel(
    x_ref,      # (Bt, S, H)  compute dtype (bf16 fast path / f32)
    wq_ref,     # (H, H)
    bq_ref,     # (1, H)  f32
    wk_ref,     # (H, H)
    bk_ref,     # (1, H)  f32
    wqa_ref,    # (H, nh)  (1/sqrt(d) pre-folded)
    bqa_ref,    # (1, nh)  f32 (1/sqrt(d) pre-folded)
    wka_ref,    # (H, nh)  (1/sqrt(d) pre-folded)
    bka_ref,    # (1, nh)  f32 (1/sqrt(d) pre-folded)
    wt_ref,     # (H, H)
    bt_ref,     # (1, H)  f32
    mask_ref,   # (nh, H) f32 block-diagonal head-expand mask
    out_ref,    # (Bt, S, H)
):
    f32 = jnp.float32
    Bt, S, H = x_ref.shape
    BS = Bt * S
    cdt = x_ref.dtype            # MXU operand dtype

    mask = mask_ref[...]         # (nh, H) f32

    # Shared linears on the flattened (Bt*S, H) slab: large MXU M dimension,
    # low-precision operands, f32 accumulation.
    x2 = x_ref[...].reshape(BS, H)
    q = jnp.dot(x2, wq_ref[...], preferred_element_type=f32) + bq_ref[...]  # (BS,H) f32
    k = jnp.dot(x2, wk_ref[...], preferred_element_type=f32) + bk_ref[...]  # (BS,H) f32
    q_c = q.astype(cdt)
    q3_c = q_c.reshape(Bt, S, H)

    def head_softmax(scores):
        # (BS, nh) f32 logits -> (Bt, nh, S) f32 softmax weights over S,
        # laid out lane-major (S on lanes) so max/exp/sum run along lanes and
        # the result is already the transposed LHS for the pooled matmul.
        st = jnp.swapaxes(scores.reshape(Bt, S, nh := scores.shape[-1]), 1, 2)
        st = st - jnp.max(st, axis=-1, keepdims=True)
        e = jnp.exp(st)
        denom = jnp.sum(e, axis=-1, keepdims=True)
        return e * pl.reciprocal(denom, approx=True)             # (Bt, nh, S)

    def head_pool(w_t, v_c):
        # (Bt, nh, S) weights, (Bt, S, H) values -> (Bt, 1, H) pooled vector.
        # S-reduction happens on the MXU (contraction dim = S); the per-column
        # head is then selected with the block-diagonal mask and a tiny
        # nh-axis reduction.
        ph = jnp.einsum('bhs,bsc->bhc', w_t.astype(cdt), v_c,
                        preferred_element_type=f32)              # (Bt, nh, H)
        return jnp.sum(ph * mask[None], axis=1, keepdims=True)   # (Bt, 1, H)

    # query attention -> pooled_query (scale already folded into wqa/bqa).
    alpha = head_softmax(
        jnp.dot(q_c, wqa_ref[...], preferred_element_type=f32) + bqa_ref[...])
    pooled_q = head_pool(alpha, q3_c)                            # (Bt, 1, H)

    # mixed_query_key_layer = key * pooled_query (broadcast over seq).
    qk = k.reshape(Bt, S, H) * pooled_q                          # (Bt, S, H) f32
    qk_c = qk.astype(cdt)

    beta = head_softmax(
        jnp.dot(qk_c.reshape(BS, H), wka_ref[...],
                preferred_element_type=f32) + bka_ref[...])
    pooled_k = head_pool(beta, qk_c)                             # (Bt, 1, H)

    # weighted_value = pooled_key * query_layer, then transform + residual.
    wv_c = (pooled_k * q.reshape(Bt, S, H)).astype(cdt).reshape(BS, H)
    out = jnp.dot(wv_c, wt_ref[...], preferred_element_type=f32) + bt_ref[...] + q
    out_ref[...] = out.reshape(Bt, S, H).astype(out_ref.dtype)


def _choose_block_b(B, S, H, itemsize, act_budget_bytes=8 << 20):
    """Batch block size: amortize per-grid-step overhead, stay well inside VMEM
    (v7x only has 64 MiB), and keep >= 2 grid steps so both v7x TensorCores
    get work under dimension_semantics=('parallel',)."""
    # ~10 f32 temporaries per (s, h) element + double-buffered in/out blocks.
    per_batch = S * H * (10 * 4 + 4 * itemsize)
    bt = max(1, min(B, act_budget_bytes // max(per_batch, 1)))
    if B >= 2:
        bt = min(bt, max(1, B // 2))
    while B % bt:
        bt -= 1
    return int(bt)


def _cost_estimate(B, S, H, nh, in_itemsize, out_itemsize):
    matmul_flops = 2 * B * S * H * (3 * H + 2 * nh)      # q, k, transform, 2x *_att
    pool_flops = 2 * 2 * B * nh * S * H                  # two pooled matmuls
    elemwise_flops = 10 * B * S * H                      # broadcasts / residual / softmax adds
    flops = matmul_flops + pool_flops + elemwise_flops
    transcendentals = 2 * B * nh * S                     # exp in the two softmaxes
    weight_bytes = (3 * H * H + 2 * H * nh) * in_itemsize + (3 * H + 2 * nh) * 4
    bytes_accessed = B * S * H * (in_itemsize + out_itemsize) + weight_bytes
    return pl.CostEstimate(flops=flops, transcendentals=transcendentals,
                           bytes_accessed=bytes_accessed)


def fast_self_attention(hidden_states, params, num_heads, *,
                        compute_dtype=jnp.bfloat16, block_b=None):
    """hidden_states: (B, S, H). params: dict of (in, out)-transposed f32 weights.

    Matmuls use `compute_dtype` operands (bf16 default) with f32 accumulation;
    softmax / pooling math stays in f32.
    """
    B, S, H = hidden_states.shape
    nh = num_heads
    d = H // nh
    scale = 1.0 / (d ** 0.5)
    cdt = jnp.dtype(compute_dtype)
    f32 = jnp.float32

    x = hidden_states.astype(cdt)
    # Fold the 1/sqrt(d) attention scale into the *_att weights/biases.
    wq, bq = params["wq"].astype(cdt), params["bq"].astype(f32)
    wk, bk = params["wk"].astype(cdt), params["bk"].astype(f32)
    wqa = (params["wqa"] * scale).astype(cdt)
    bqa = (params["bqa"] * scale).astype(f32)
    wka = (params["wka"] * scale).astype(cdt)
    bka = (params["bka"] * scale).astype(f32)
    wt, bt = params["wt"].astype(cdt), params["bt"].astype(f32)

    # Block-diagonal expand mask: mask[h, c] = 1 iff column c belongs to head h.
    head_of_col = jnp.arange(H, dtype=jnp.int32) // d
    mask = (head_of_col[None, :] ==
            jnp.arange(nh, dtype=jnp.int32)[:, None]).astype(f32)       # (nh, H)

    bb = block_b if block_b is not None else _choose_block_b(B, S, H, cdt.itemsize)
    grid = (B // bb,)

    # Rough per-step VMEM need (activations + buffered weights / in / out blocks).
    act_bytes = bb * S * H * (10 * 4 + 4 * cdt.itemsize)
    wgt_bytes = 2 * (3 * H * H + 2 * H * nh) * cdt.itemsize
    vmem_limit = int(min(max(act_bytes + wgt_bytes + (4 << 20), 16 << 20), 48 << 20))

    full = lambda shape: pl.BlockSpec(shape, lambda b: tuple(0 for _ in shape))

    return pl.pallas_call(
        _fast_self_attention_kernel,
        out_shape=jax.ShapeDtypeStruct((B, S, H), hidden_states.dtype),
        grid_spec=pltpu.PrefetchScalarGridSpec(
            num_scalar_prefetch=0,
            grid=grid,
            in_specs=[
                pl.BlockSpec((bb, S, H), lambda b: (b, 0, 0)),   # hidden_states
                full((H, H)),    # wq
                full((1, H)),    # bq
                full((H, H)),    # wk
                full((1, H)),    # bk
                full((H, nh)),   # wqa (scale folded)
                full((1, nh)),   # bqa (scale folded)
                full((H, nh)),   # wka (scale folded)
                full((1, nh)),   # bka (scale folded)
                full((H, H)),    # wt
                full((1, H)),    # bt
                full((nh, H)),   # head-expand mask
            ],
            out_specs=pl.BlockSpec((bb, S, H), lambda b: (b, 0, 0)),
        ),
        compiler_params=pltpu.CompilerParams(
            dimension_semantics=("parallel",),
            vmem_limit_bytes=vmem_limit),
        cost_estimate=_cost_estimate(B, S, H, nh, cdt.itemsize,
                                     jnp.dtype(hidden_states.dtype).itemsize),
    )(x, wq, bq, wk, bk, wqa, bqa, wka, bka, wt, bt, mask)


def reference_fast_self_attention(x, params, num_heads):
    """Pure-JAX reference mirroring the PyTorch forward exactly (f32)."""
    B, S, H = x.shape
    nh = num_heads
    d = H // nh
    scale = 1.0 / (d ** 0.5)

    q = x @ params["wq"] + params["bq"][0]                    # (B, S, H)
    k = x @ params["wk"] + params["bk"][0]                    # (B, S, H)

    q_score = (q @ params["wqa"] + params["bqa"][0]) * scale  # (B, S, nh)
    q_w = jax.nn.softmax(jnp.transpose(q_score, (0, 2, 1)), axis=-1)    # (B, nh, S)
    q_layer = jnp.transpose(q.reshape(B, S, nh, d), (0, 2, 1, 3))       # (B, nh, S, d)
    pooled_q = jnp.einsum("bhs,bhsd->bhd", q_w, q_layer)                # (B, nh, d)
    pooled_q = pooled_q.reshape(B, 1, H)

    qk = k * pooled_q                                         # (B, S, H)
    qk_score = (qk @ params["wka"] + params["bka"][0]) * scale
    qk_w = jax.nn.softmax(jnp.transpose(qk_score, (0, 2, 1)), axis=-1)  # (B, nh, S)
    k_layer = jnp.transpose(qk.reshape(B, S, nh, d), (0, 2, 1, 3))      # (B, nh, S, d)
    pooled_k = jnp.einsum("bhs,bhsd->bhd", qk_w, k_layer)               # (B, nh, d)

    wv = pooled_k[:, :, None, :] * q_layer                    # (B, nh, S, d)
    wv = jnp.transpose(wv, (0, 2, 1, 3)).reshape(B, S, H)
    return wv @ params["wt"] + params["bt"][0] + q


if __name__ == "__main__":
    NH = 4
    INIT_RANGE = 0.02

    def make_case(key, B, S, H):
        ks = jax.random.split(key, 6)
        x = jax.random.normal(ks[0], (B, S, H), dtype=jnp.float32)
        params = {
            "wq":  (INIT_RANGE * jax.random.normal(ks[1], (H, H))).T,
            "bq":  jnp.zeros((1, H), jnp.float32),
            "wk":  (INIT_RANGE * jax.random.normal(ks[2], (H, H))).T,
            "bk":  jnp.zeros((1, H), jnp.float32),
            "wqa": (INIT_RANGE * jax.random.normal(ks[3], (NH, H))).T,
            "bqa": jnp.zeros((1, NH), jnp.float32),
            "wka": (INIT_RANGE * jax.random.normal(ks[4], (NH, H))).T,
            "bka": jnp.zeros((1, NH), jnp.float32),
            "wt":  (INIT_RANGE * jax.random.normal(ks[5], (H, H))).T,
            "bt":  jnp.zeros((1, H), jnp.float32),
        }
        params = {k: jnp.asarray(v, jnp.float32) for k, v in params.items()}
        return x, params

    key1, key2, key3 = jax.random.split(jax.random.PRNGKey(0), 3)

    # Case 1: module-sized config (hidden_size=32, num_heads=4), f32 compute path.
    x1, p1 = make_case(key1, 2, 8, 32)
    out1 = jax.block_until_ready(
        fast_self_attention(x1, p1, NH, compute_dtype=jnp.float32))
    ref1 = reference_fast_self_attention(x1, p1, NH)
    assert out1.shape == x1.shape
    err1 = float(jnp.max(jnp.abs(out1 - ref1)))
    assert err1 < 1e-3, f"f32 path max abs err {err1}"

    # Case 2: bf16 MXU fast path with batch-blocking (block_b > 1 exercised).
    x2, p2 = make_case(key2, 8, 16, 64)
    out2 = jax.block_until_ready(
        fast_self_attention(x2, p2, NH, compute_dtype=jnp.bfloat16))
    ref2 = reference_fast_self_attention(x2, p2, NH)
    assert out2.shape == x2.shape
    err2 = float(jnp.max(jnp.abs(out2.astype(jnp.float32) - ref2)))
    assert err2 < 3e-2, f"bf16 path max abs err {err2}"

    # Case 3: lane-full hidden (H=128) bf16 path — lane-dense matmuls / stores.
    x3, p3 = make_case(key3, 4, 16, 128)
    out3 = jax.block_until_ready(
        fast_self_attention(x3, p3, NH, compute_dtype=jnp.bfloat16))
    ref3 = reference_fast_self_attention(x3, p3, NH)
    assert out3.shape == x3.shape
    err3 = float(jnp.max(jnp.abs(out3.astype(jnp.float32) - ref3)))
    assert err3 < 3e-2, f"bf16 H=128 path max abs err {err3}"

    print("KERNEL_OK")
</pallas_src>

<mosaic_0001>
module attributes {stable_mosaic.version = 11 : i64} {
  func.func @_fast_self_attention_kernel(%arg0: i32, %arg1: memref<1x8x32xf32, #tpu.memory_space<vmem>>, %arg2: memref<32x32xf32, #tpu.memory_space<vmem>>, %arg3: memref<1x32xf32, #tpu.memory_space<vmem>>, %arg4: memref<32x32xf32, #tpu.memory_space<vmem>>, %arg5: memref<1x32xf32, #tpu.memory_space<vmem>>, %arg6: memref<32x4xf32, #tpu.memory_space<vmem>>, %arg7: memref<1x4xf32, #tpu.memory_space<vmem>>, %arg8: memref<32x4xf32, #tpu.memory_space<vmem>>, %arg9: memref<1x4xf32, #tpu.memory_space<vmem>>, %arg10: memref<32x32xf32, #tpu.memory_space<vmem>>, %arg11: memref<1x32xf32, #tpu.memory_space<vmem>>, %arg12: memref<4x32xf32, #tpu.memory_space<vmem>>, %arg13: memref<1x8x32xf32, #tpu.memory_space<vmem>>) attributes {dimension_semantics = [#tpu.dimension_semantics<parallel>], iteration_bounds = array<i64: 2>, scalar_prefetch = 0 : i64, scratch_operands = 0 : i64, tpu.core_type = #tpu.core_type<tc>, window_params = [{transform_indices = @transform_0, window_bounds = array<i64: 1, 8, 32>}, {pipeline_mode = #tpu.pipeline_mode<synchronous>, transform_indices = @transform_1, window_bounds = array<i64: 32, 32>}, {pipeline_mode = #tpu.pipeline_mode<synchronous>, transform_indices = @transform_2, window_bounds = array<i64: 1, 32>}, {pipeline_mode = #tpu.pipeline_mode<synchronous>, transform_indices = @transform_3, window_bounds = array<i64: 32, 32>}, {pipeline_mode = #tpu.pipeline_mode<synchronous>, transform_indices = @transform_4, window_bounds = array<i64: 1, 32>}, {pipeline_mode = #tpu.pipeline_mode<synchronous>, transform_indices = @transform_5, window_bounds = array<i64: 32, 4>}, {pipeline_mode = #tpu.pipeline_mode<synchronous>, transform_indices = @transform_6, window_bounds = array<i64: 1, 4>}, {pipeline_mode = #tpu.pipeline_mode<synchronous>, transform_indices = @transform_7, window_bounds = array<i64: 32, 4>}, {pipeline_mode = #tpu.pipeline_mode<synchronous>, transform_indices = @transform_8, window_bounds = array<i64: 1, 4>}, {pipeline_mode = #tpu.pipeline_mode<synchronous>, transform_indices = @transform_9, window_bounds = array<i64: 32, 32>}, {pipeline_mode = #tpu.pipeline_mode<synchronous>, transform_indices = @transform_10, window_bounds = array<i64: 1, 32>}, {pipeline_mode = #tpu.pipeline_mode<synchronous>, transform_indices = @transform_11, window_bounds = array<i64: 4, 32>}, {transform_indices = @transform_12, window_bounds = array<i64: 1, 8, 32>}]} {
    %c0 = arith.constant 0 : index
    %c0_0 = arith.constant 0 : index
    %0 = vector.load %arg12[%c0, %c0_0] : memref<4x32xf32, #tpu.memory_space<vmem>>, vector<4x32xf32>
    %c0_1 = arith.constant 0 : index
    %c0_2 = arith.constant 0 : index
    %c0_3 = arith.constant 0 : index
    %1 = vector.load %arg1[%c0_1, %c0_2, %c0_3] : memref<1x8x32xf32, #tpu.memory_space<vmem>>, vector<1x8x32xf32>
    %2 = vector.shape_cast %1 : vector<1x8x32xf32> to vector<8x32xf32>
    %c0_4 = arith.constant 0 : index
    %c0_5 = arith.constant 0 : index
    %3 = vector.load %arg2[%c0_4, %c0_5] : memref<32x32xf32, #tpu.memory_space<vmem>>, vector<32x32xf32>
    %cst = arith.constant dense<0.000000e+00> : vector<8x32xf32>
    %4 = tpu.matmul %2, %3, %cst {dimension_numbers = #tpu.dot_dimension_numbers<[1], [0], [0], [1], [0, 0, 1, 1], [], []>} : vector<8x32xf32>, vector<32x32xf32>, vector<8x32xf32> -> vector<8x32xf32>
    %c0_6 = arith.constant 0 : index
    %c0_7 = arith.constant 0 : index
    %5 = vector.load %arg3[%c0_6, %c0_7] : memref<1x32xf32, #tpu.memory_space<vmem>>, vector<1x32xf32>
    %6 = vector.broadcast %5 : vector<1x32xf32> to vector<8x32xf32>
    %7 = arith.addf %4, %6 : vector<8x32xf32>
    %c0_8 = arith.constant 0 : index
    %c0_9 = arith.constant 0 : index
    %8 = vector.load %arg4[%c0_8, %c0_9] : memref<32x32xf32, #tpu.memory_space<vmem>>, vector<32x32xf32>
    %cst_10 = arith.constant dense<0.000000e+00> : vector<8x32xf32>
    %9 = tpu.matmul %2, %8, %cst_10 {dimension_numbers = #tpu.dot_dimension_numbers<[1], [0], [0], [1], [0, 0, 1, 1], [], []>} : vector<8x32xf32>, vector<32x32xf32>, vector<8x32xf32> -> vector<8x32xf32>
    %c0_11 = arith.constant 0 : index
    %c0_12 = arith.constant 0 : index
    %10 = vector.load %arg5[%c0_11, %c0_12] : memref<1x32xf32, #tpu.memory_space<vmem>>, vector<1x32xf32>
    %11 = vector.broadcast %10 : vector<1x32xf32> to vector<8x32xf32>
    %12 = arith.addf %9, %11 : vector<8x32xf32>
    %13 = vector.shape_cast %7 : vector<8x32xf32> to vector<1x8x32xf32>
    %c0_13 = arith.constant 0 : index
    %c0_14 = arith.constant 0 : index
    %14 = vector.load %arg6[%c0_13, %c0_14] : memref<32x4xf32, #tpu.memory_space<vmem>>, vector<32x4xf32>
    %cst_15 = arith.constant dense<0.000000e+00> : vector<8x4xf32>
    %15 = tpu.matmul %7, %14, %cst_15 {dimension_numbers = #tpu.dot_dimension_numbers<[1], [0], [0], [1], [0, 0, 1, 1], [], []>} : vector<8x32xf32>, vector<32x4xf32>, vector<8x4xf32> -> vector<8x4xf32>
    %c0_16 = arith.constant 0 : index
    %c0_17 = arith.constant 0 : index
    %16 = vector.load %arg7[%c0_16, %c0_17] : memref<1x4xf32, #tpu.memory_space<vmem>>, vector<1x4xf32>
    %17 = vector.broadcast %16 : vector<1x4xf32> to vector<8x4xf32>
    %18 = arith.addf %15, %17 : vector<8x4xf32>
    %19 = vector.shape_cast %18 : vector<8x4xf32> to vector<1x8x4xf32>
    %20 = tpu.transpose %19, [0, 2, 1] : vector<1x8x4xf32> -> vector<1x4x8xf32>
    %cst_18 = arith.constant dense<0xFF800000> : vector<1x4xf32>
    %21 = vector.multi_reduction <maximumf>, %20, %cst_18 [2] : vector<1x4x8xf32> to vector<1x4xf32>
    %22 = vector.shape_cast %21 : vector<1x4xf32> to vector<1x4x1xf32>
    %23 = vector.broadcast %22 : vector<1x4x1xf32> to vector<1x4x8xf32>
    %24 = arith.subf %20, %23 : vector<1x4x8xf32>
    %25 = math.exp %24 : vector<1x4x8xf32>
    %cst_19 = arith.constant dense<0.000000e+00> : vector<1x4xf32>
    %26 = vector.multi_reduction <add>, %25, %cst_19 [2] : vector<1x4x8xf32> to vector<1x4xf32>
    %27 = vector.shape_cast %26 : vector<1x4xf32> to vector<1x4x1xf32>
    %28 = tpu.reciprocal %27 {approx = true} : vector<1x4x1xf32> -> vector<1x4x1xf32>
    %29 = vector.broadcast %28 : vector<1x4x1xf32> to vector<1x4x8xf32>
    %30 = arith.mulf %25, %29 : vector<1x4x8xf32>
    "tpu.trace_start"() <{level = 10 : i32, message = "bhs,bsc->bhc"}> : () -> ()
    %cst_20 = arith.constant dense<0.000000e+00> : vector<1x4x32xf32>
    %31 = tpu.matmul %30, %13, %cst_20 {dimension_numbers = #tpu.dot_dimension_numbers<[2], [1], [1], [2], [0, 0, 0, 1, 1, 2], [0], [0]>} : vector<1x4x8xf32>, vector<1x8x32xf32>, vector<1x4x32xf32> -> vector<1x4x32xf32>
    "tpu.trace_stop"() : () -> ()
    %32 = vector.shape_cast %0 : vector<4x32xf32> to vector<1x4x32xf32>
    %33 = arith.mulf %31, %32 : vector<1x4x32xf32>
    %cst_21 = arith.constant dense<0.000000e+00> : vector<1x32xf32>
    %34 = vector.multi_reduction <add>, %33, %cst_21 [1] : vector<1x4x32xf32> to vector<1x32xf32>
    %35 = vector.shape_cast %34 : vector<1x32xf32> to vector<1x1x32xf32>
    %36 = vector.shape_cast %12 : vector<8x32xf32> to vector<1x8x32xf32>
    %37 = vector.broadcast %35 : vector<1x1x32xf32> to vector<1x8x32xf32>
    %38 = arith.mulf %36, %37 : vector<1x8x32xf32>
    %39 = vector.shape_cast %38 : vector<1x8x32xf32> to vector<8x32xf32>
    %c0_22 = arith.constant 0 : index
    %c0_23 = arith.constant 0 : index
    %40 = vector.load %arg8[%c0_22, %c0_23] : memref<32x4xf32, #tpu.memory_space<vmem>>, vector<32x4xf32>
    %cst_24 = arith.constant dense<0.000000e+00> : vector<8x4xf32>
    %41 = tpu.matmul %39, %40, %cst_24 {dimension_numbers = #tpu.dot_dimension_numbers<[1], [0], [0], [1], [0, 0, 1, 1], [], []>} : vector<8x32xf32>, vector<32x4xf32>, vector<8x4xf32> -> vector<8x4xf32>
    %c0_25 = arith.constant 0 : index
    %c0_26 = arith.constant 0 : index
    %42 = vector.load %arg9[%c0_25, %c0_26] : memref<1x4xf32, #tpu.memory_space<vmem>>, vector<1x4xf32>
    %43 = vector.broadcast %42 : vector<1x4xf32> to vector<8x4xf32>
    %44 = arith.addf %41, %43 : vector<8x4xf32>
    %45 = vector.shape_cast %44 : vector<8x4xf32> to vector<1x8x4xf32>
    %46 = tpu.transpose %45, [0, 2, 1] : vector<1x8x4xf32> -> vector<1x4x8xf32>
    %cst_27 = arith.constant dense<0xFF800000> : vector<1x4xf32>
    %47 = vector.multi_reduction <maximumf>, %46, %cst_27 [2] : vector<1x4x8xf32> to vector<1x4xf32>
    %48 = vector.shape_cast %47 : vector<1x4xf32> to vector<1x4x1xf32>
    %49 = vector.broadcast %48 : vector<1x4x1xf32> to vector<1x4x8xf32>
    %50 = arith.subf %46, %49 : vector<1x4x8xf32>
    %51 = math.exp %50 : vector<1x4x8xf32>
    %cst_28 = arith.constant dense<0.000000e+00> : vector<1x4xf32>
    %52 = vector.multi_reduction <add>, %51, %cst_28 [2] : vector<1x4x8xf32> to vector<1x4xf32>
    %53 = vector.shape_cast %52 : vector<1x4xf32> to vector<1x4x1xf32>
    %54 = tpu.reciprocal %53 {approx = true} : vector<1x4x1xf32> -> vector<1x4x1xf32>
    %55 = vector.broadcast %54 : vector<1x4x1xf32> to vector<1x4x8xf32>
    %56 = arith.mulf %51, %55 : vector<1x4x8xf32>
    "tpu.trace_start"() <{level = 10 : i32, message = "bhs,bsc->bhc"}> : () -> ()
    %cst_29 = arith.constant dense<0.000000e+00> : vector<1x4x32xf32>
    %57 = tpu.matmul %56, %38, %cst_29 {dimension_numbers = #tpu.dot_dimension_numbers<[2], [1], [1], [2], [0, 0, 0, 1, 1, 2], [0], [0]>} : vector<1x4x8xf32>, vector<1x8x32xf32>, vector<1x4x32xf32> -> vector<1x4x32xf32>
    "tpu.trace_stop"() : () -> ()
    %58 = vector.shape_cast %0 : vector<4x32xf32> to vector<1x4x32xf32>
    %59 = arith.mulf %57, %58 : vector<1x4x32xf32>
    %cst_30 = arith.constant dense<0.000000e+00> : vector<1x32xf32>
    %60 = vector.multi_reduction <add>, %59, %cst_30 [1] : vector<1x4x32xf32> to vector<1x32xf32>
    %61 = vector.shape_cast %60 : vector<1x32xf32> to vector<1x1x32xf32>
    %62 = vector.shape_cast %7 : vector<8x32xf32> to vector<1x8x32xf32>
    %63 = vector.broadcast %61 : vector<1x1x32xf32> to vector<1x8x32xf32>
    %64 = arith.mulf %63, %62 : vector<1x8x32xf32>
    %65 = vector.shape_cast %64 : vector<1x8x32xf32> to vector<8x32xf32>
    %c0_31 = arith.constant 0 : index
    %c0_32 = arith.constant 0 : index
    %66 = vector.load %arg10[%c0_31, %c0_32] : memref<32x32xf32, #tpu.memory_space<vmem>>, vector<32x32xf32>
    %cst_33 = arith.constant dense<0.000000e+00> : vector<8x32xf32>
    %67 = tpu.matmul %65, %66, %cst_33 {dimension_numbers = #tpu.dot_dimension_numbers<[1], [0], [0], [1], [0, 0, 1, 1], [], []>} : vector<8x32xf32>, vector<32x32xf32>, vector<8x32xf32> -> vector<8x32xf32>
    %c0_34 = arith.constant 0 : index
    %c0_35 = arith.constant 0 : index
    %68 = vector.load %arg11[%c0_34, %c0_35] : memref<1x32xf32, #tpu.memory_space<vmem>>, vector<1x32xf32>
    %69 = vector.broadcast %68 : vector<1x32xf32> to vector<8x32xf32>
    %70 = arith.addf %67, %69 : vector<8x32xf32>
    %71 = arith.addf %70, %7 : vector<8x32xf32>
    %72 = vector.shape_cast %71 : vector<8x32xf32> to vector<1x8x32xf32>
    %c0_36 = arith.constant 0 : index
    %c0_37 = arith.constant 0 : index
    %c0_38 = arith.constant 0 : index
    %73 = vector.load %arg13[%c0_36, %c0_37, %c0_38] : memref<1x8x32xf32, #tpu.memory_space<vmem>>, vector<1x8x32xf32>
    tpu.vector_store %arg13[%c0_36, %c0_37, %c0_38], %72 {strides = array<i32>} : memref<1x8x32xf32, #tpu.memory_space<vmem>>, vector<1x8x32xf32>,
    return
  }
  func.func @transform_0(%arg0: i32) -> (i32, i32, i32) {
    %c0_i32 = arith.constant 0 : i32
    %c0_i32_0 = arith.constant 0 : i32
    %c0_i32_1 = arith.constant 0 : i32
    return %arg0, %c0_i32, %c0_i32_0 : i32, i32, i32
  }
  func.func @transform_1(%arg0: i32) -> (i32, i32) {
    %c0_i32 = arith.constant 0 : i32
    %c0_i32_0 = arith.constant 0 : i32
    %c0_i32_1 = arith.constant 0 : i32
    return %c0_i32, %c0_i32_0 : i32, i32
  }
  func.func @transform_2(%arg0: i32) -> (i32, i32) {
    %c0_i32 = arith.constant 0 : i32
    %c0_i32_0 = arith.constant 0 : i32
    %c0_i32_1 = arith.constant 0 : i32
    return %c0_i32, %c0_i32_0 : i32, i32
  }
  func.func @transform_3(%arg0: i32) -> (i32, i32) {
    %c0_i32 = arith.constant 0 : i32
    %c0_i32_0 = arith.constant 0 : i32
    %c0_i32_1 = arith.constant 0 : i32
    return %c0_i32, %c0_i32_0 : i32, i32
  }
  func.func @transform_4(%arg0: i32) -> (i32, i32) {
    %c0_i32 = arith.constant 0 : i32
    %c0_i32_0 = arith.constant 0 : i32
    %c0_i32_1 = arith.constant 0 : i32
    return %c0_i32, %c0_i32_0 : i32, i32
  }
  func.func @transform_5(%arg0: i32) -> (i32, i32) {
    %c0_i32 = arith.constant 0 : i32
    %c0_i32_0 = arith.constant 0 : i32
    %c0_i32_1 = arith.constant 0 : i32
    return %c0_i32, %c0_i32_0 : i32, i32
  }
  func.func @transform_6(%arg0: i32) -> (i32, i32) {
    %c0_i32 = arith.constant 0 : i32
    %c0_i32_0 = arith.constant 0 : i32
    %c0_i32_1 = arith.constant 0 : i32
    return %c0_i32, %c0_i32_0 : i32, i32
  }
  func.func @transform_7(%arg0: i32) -> (i32, i32) {
    %c0_i32 = arith.constant 0 : i32
    %c0_i32_0 = arith.constant 0 : i32
    %c0_i32_1 = arith.constant 0 : i32
    return %c0_i32, %c0_i32_0 : i32, i32
  }
  func.func @transform_8(%arg0: i32) -> (i32, i32) {
    %c0_i32 = arith.constant 0 : i32
    %c0_i32_0 = arith.constant 0 : i32
    %c0_i32_1 = arith.constant 0 : i32
    return %c0_i32, %c0_i32_0 : i32, i32
  }
  func.func @transform_9(%arg0: i32) -> (i32, i32) {
    %c0_i32 = arith.constant 0 : i32
    %c0_i32_0 = arith.constant 0 : i32
    %c0_i32_1 = arith.constant 0 : i32
    return %c0_i32, %c0_i32_0 : i32, i32
  }
  func.func @transform_10(%arg0: i32) -> (i32, i32) {
    %c0_i32 = arith.constant 0 : i32
    %c0_i32_0 = arith.constant 0 : i32
    %c0_i32_1 = arith.constant 0 : i32
    return %c0_i32, %c0_i32_0 : i32, i32
  }
  func.func @transform_11(%arg0: i32) -> (i32, i32) {
    %c0_i32 = arith.constant 0 : i32
    %c0_i32_0 = arith.constant 0 : i32
    %c0_i32_1 = arith.constant 0 : i32
    return %c0_i32, %c0_i32_0 : i32, i32
  }
  func.func @transform_12(%arg0: i32) -> (i32, i32, i32) {
    %c0_i32 = arith.constant 0 : i32
    %c0_i32_0 = arith.constant 0 : i32
    %c0_i32_1 = arith.constant 0 : i32
    return %arg0, %c0_i32, %c0_i32_0 : i32, i32, i32
  }
}

</mosaic_0001>

<bundles_post_ra>
// kernel: tpu_custom_call.1
= control target key start
LH: loop header
LB: loop body
LE: loop exit
PB: predicated region body
PF: predicated region fallthrough
CT: control target
= control target key end

     0   :  { %s2043_s0 = inlined_call_operand.hbm [shape: f32[2,8,32], index: 0, kind: input, shape index: {}]   ;;  %s2044_s1 = inlined_call_operand.vmem [shape: f32[32,32], index: 1, kind: input, shape index: {}]   ;;  %s2045_s2 = inlined_call_operand.vmem [shape: f32[1,32], index: 2, kind: input, shape index: {}]   ;;  %s2046_s3 = inlined_call_operand.vmem [shape: f32[32,32], index: 3, kind: input, shape index: {}]   ;;  %s2047_s4 = inlined_call_operand.vmem [shape: f32[1,32], index: 4, kind: input, shape index: {}]   ;;  %s2048_s5 = inlined_call_operand.vmem [shape: f32[32,4], index: 5, kind: input, shape index: {}]   ;;  %s2049_s6 = inlined_call_operand.hbm [shape: f32[1,4], index: 6, kind: input, shape index: {}]   ;;  %s2050_s7 = inlined_call_operand.vmem [shape: f32[32,4], index: 7, kind: input, shape index: {}]   ;;  %s2051_s8 = inlined_call_operand.hbm [shape: f32[1,4], index: 8, kind: input, shape index: {}]   ;;  %s2052_s9 = inlined_call_operand.vmem [shape: f32[32,32], index: 9, kind: input, shape index: {}]   ;;  %s2053_s10 = inlined_call_operand.vmem [shape: f32[1,32], index: 10, kind: input, shape index: {}]   ;;  %s2054_s11 = inlined_call_operand.vmem [shape: f32[4,32], index: 11, kind: input, shape index: {}]   ;;  %s2055_s12 = inlined_call_operand.hbm [shape: f32[2,8,32], index: 12, kind: output, shape index: {}]  }
   0x1   :  { %2062 = sst [smem:[#allocation14_spill]] %s2049_s6 }
   0x2   :  { %2063 = sst [smem:[#allocation15_spill]] %s2055_s12 }
   0x3   :  { %17 = vsyncpa [#allocation3], 0 }
   0x4   :  { %19 = vsyncpa [#allocation3 + $0x1], 0 }
   0x5   :  { %20 = vsyncpa [#allocation6], 0 }
   0x6   :  { %21 = vsyncpa [#allocation4], 0 }
   0x7   :  { %23 = vsyncpa [#allocation4 + $0x1], 0  ;;  %s1692_s21 = smov 0   ;;  %s1694_s22 = smov 0  }
   0x8   :  { %s1696_s23 = smov 0   ;;  %s1698_s24 = smov 0  }
   0x9 LB: > { %2064 = sst [smem:[#allocation12_spill]] %s1606_s21  ;;  %s1713_s25 = sadd.s32 4294967295, %s1618_s24   ;;  %s1618_s24 = sphi %s1698_s24, %s2087_s24   ;;  %s1614_s23 = sphi %s1696_s23, %s2086_s23   ;;  %s1610_s22 = sphi %s1694_s22, %s2085_s22   ;;  %s1606_s21 = sphi %s1692_s21, %s2084_s21  }
   0xa   : > { %s1232_s26 = sadd.s32 4294967294, %s1618_s24   ;;  %p49_p0 = scmp.ne.s32.totalorder %s1610_s22, %s1606_s21 }
   0xb   : > { %p2058_p1 = scmp.eq.s32.totalorder %s1713_s25, 0  ;;  %p310_p3 = scmp.eq.s32.totalorder %s1232_s26, 1 }
   0xc   : > { %p1233_p5 = scmp.ge.s32.totalorder %s1618_s24, 1  ;;  %p317_p7 = scmp.lt.s32.totalorder %s1618_s24, 3 }
   0xd   : > { %p1722_p4 = por %p2058_p1, %p49_p0  ;;  %p1727_p6 = por %p310_p3, %p49_p0 }
   0xe   : > { %p1732_p8 = pnand %p1233_p5, %p317_p7  ;;  %s1620_s30 = smov [#allocation5]  }
   0xf   : > { %s2065_s27 = scalar_select %p1722_p4, 1, 0 }
  0x10   : > { %s2066_s28 = scalar_select %p1727_p6, 1, 0 }
  0x11   : > { %s2068_s29 = scalar_select %p1732_p8, 1, 0 }
  0x12   : > { %2067 = sst [smem:[#allocation13_spill]] %s2066_s28  ;;  %s345_s13 = sshll.u32 %s1620_s30, 4  ;;  %s346_s13 = int_to_ptr.vmem [resolvable:$true] %s345_s13 }
  0x13   : > { %p1396_p10 = pneg %p1732_p8  ;;  %s1621_s14 = smov [#allocation7]  }
  0x14   : > { %s359_s15 = sshll.u32 %s1621_s14, 4  ;;  %s1748_s17 = sadd.s32 1, %s1618_s24   ;;  %s1745_s15 = int_to_ptr.vmem [resolvable:$true] %s359_s15 }
  0x15   : > { %p1741_p11 = pnand %p1396_p10, %p2058_p1  ;;  %s2070_s6 = sld [smem:[#allocation14_spill]] }
  0x17   : > { %p1464_p13 = pneg %p1741_p11 }
  0x1b   : > { %s1462_s26 = scalar_lea.hbm %s2070_s6, 16 }
  0x1c   : > { %p1463_p12 = scmp.ne.s32.totalorder %s2070_s6, %s1462_s26  ;;  %p1469_p5 = scmp.lt.u32.totalorder %s1462_s26, %s2070_s6 }
  0x1e   : > { %p1465_p0 = pnand %p1464_p13, %p1463_p12 }
  0x20   : > { %p1466_p3 = pneg %p1465_p0 }
  0x22   : > { %p1471_p7 = pnand %p1469_p5, %p1466_p3 }
  0x24   : > { %1474 = shalt.err (!%p1471_p7)
}
  0x25   : > { %s1475_s18 = scalar_lea.vmem %s346_s13, 16  ;;  %s1482_s28 = scalar_lea.vmem %s346_s13, 32 }
  0x26   : > { %p1476_p10 = scmp.ne.s32.totalorder %s346_s13, %s1475_s18  ;;  %p1483_p2 = scmp.lt.s32.totalorder %s346_s13, %s346_s13 }
  0x27   : > { %p1484_p6 = scmp.lt.s32.totalorder %s1482_s28, %s1475_s18 }
  0x28   : > { %p1478_p9 = pnand %p1476_p10, %p1464_p13 }
  0x29   : > { %p1485_p4 = por %p1484_p6, %p1483_p2 }
  0x2a   : > { %p1479_p1 = pneg %p1478_p9 }
  0x2c   : > { %p1486_p8 = pnand %p1485_p4, %p1479_p1 }
  0x2e   : > { %1489 = shalt.err (!%p1486_p8)
}
  0x2f   : > { %1399 = dma.hbm_to_vmem [thread:$0]  (!%p1741_p11), %s2070_s6, 16, %s346_s13, [#allocation6]  }
  0x30   : > { %s1490_s30 = scalar_lea.hbm %s2051_s8, 16 }
  0x31   : > { %p1491_p9 = scmp.ne.s32.totalorder %s2051_s8, %s1490_s30  ;;  %p1497_p4 = scmp.lt.u32.totalorder %s1490_s30, %s2051_s8 }
  0x33   : > { %p1493_p2 = pnand %p1491_p9, %p1464_p13 }
  0x35   : > { %p1494_p1 = pneg %p1493_p2 }
  0x37   : > { %p1499_p6 = pnand %p1497_p4, %p1494_p1 }
  0x39   : > { %1502 = shalt.err (!%p1499_p6)
}
  0x3a   : > { %s1503_s13 = scalar_lea.vmem %s1745_s15, 16  ;;  %s1510_s12 = scalar_lea.vmem %s1745_s15, 32 }
  0x3b   : > { %p1504_p8 = scmp.ne.s32.totalorder %s1745_s15, %s1503_s13  ;;  %p1511_p3 = scmp.lt.s32.totalorder %s1745_s15, %s1745_s15 }
  0x3c   : > { %p1512_p5 = scmp.lt.s32.totalorder %s1510_s12, %s1503_s13 }
  0x3d   : > { %p1506_p12 = pnand %p1504_p8, %p1464_p13 }
  0x3e   : > { %p1513_p7 = por %p1512_p5, %p1511_p3 }
  0x3f   : > { %p1507_p0 = pneg %p1506_p12 }
  0x41   : > { %p1514_p10 = pnand %p1513_p7, %p1507_p0 }
  0x43   : > { %1517 = shalt.err (!%p1514_p10)
}
  0x44   : > { %1402 = dma.hbm_to_vmem [thread:$0]  (!%p1741_p11), %s2051_s8, 16, %s1745_s15, [#allocation6]  }
  0x45   : > { %s2071_s20 = ssub.s32 %s1618_s24, %s1748_s17  ;;  %s36_s26 = sadd.s32 1, %s1614_s23 }
  0x46   : > { %p34_p13 = scmp.eq.s32.totalorder %s2071_s20, 0  ;;  %p43_p9 = scmp.ne.s32.totalorder %s1614_s23, %s1610_s22 }
  0x47   : > { %p44_p2 = scmp.eq.s32.totalorder %s1618_s24, 0  ;;  %p2072_p4 = scmp.eq.s32.totalorder %s1713_s25, 1 }
  0x48   : > { %s1808_s16 = scalar_select %p34_p13, %s1614_s23, %s36_s26  }
  0x49   : > { %p45_p1 = por %p44_p2, %p43_p9  ;;  %p1812_p6 = por %p2072_p4, %p43_p9 }
  0x4a   : > { %p1413_p8 = scmp.lt.s32.totalorder %s1618_s24, 2  ;;  %s379_s14 = sand.u32 1, %s1614_s23  }
  0x4b   : > { %s1237_s18 = sshll.u32 %s379_s14, 3  ;;  %s1238_s28 = sshll.u32 %s1618_s24, 7 }
  0x4c   : > { %s1822_s15 = scalar_lea.hbm %s2043_s0, %s1238_s28  ;;  %s383_s19 = scalar_lea.vmem [#allocation2], %s1237_s18 }
  0x4d   : > { %s390_s21 = sshll.u32 %s383_s19, 4  ;;  %p1826_p11 = pnand %p1413_p8, %p45_p1  ;;  %s1824_s21 = int_to_ptr.vmem [resolvable:$true] %s390_s21 }
  0x4e   : > { %s380_s26 = scalar_lea.sflag [#allocation3], %s379_s14  ;;  %s1518_s6 = scalar_lea.hbm %s1822_s15, 128 }
  0x4f   : > { %p1519_p12 = scmp.ne.s32.totalorder %s1822_s15, %s1518_s6  ;;  %p1520_p0 = pneg %p1826_p11 }
  0x50   : > { %s1523_s13 = scalar_lea.hbm %s2043_s0, 256  ;;  %p1524_p7 = scmp.lt.u32.totalorder %s1822_s15, %s2043_s0 }
  0x51   : > { %p1521_p3 = pnand %p1520_p0, %p1519_p12  ;;  %p1525_p10 = scmp.lt.u32.totalorder %s1523_s13, %s1518_s6 }
  0x52   : > { %p1527_p9 = scmp.lt.u32.totalorder %s1518_s6, %s1822_s15 }
  0x53   : > { %p1522_p5 = pneg %p1521_p3  ;;  %p1526_p13 = por %p1525_p10, %p1524_p7 }
  0x55   : > { %p1528_p2 = por %p1527_p9, %p1526_p13 }
  0x57   : > { %p1529_p1 = pnand %p1528_p2, %p1522_p5 }
  0x59   : > { %1532 = shalt.err (!%p1529_p1)
}
  0x5a   : > { %s1533_s14 = scalar_lea.vmem %s1824_s21, 128  ;;  %s1622_s28 = smov [#allocation2]  }
  0x5b   : > { %p1534_p4 = scmp.ne.s32.totalorder %s1824_s21, %s1533_s14  ;;  %s1538_s18 = sshll.u32 %s1622_s28, 4  ;;  %s1539_s18 = int_to_ptr.vmem [resolvable:$false] %s1538_s18 }
  0x5c   : > { %s1540_s12 = scalar_lea.vmem %s1539_s18, 256  ;;  %p1541_p3 = scmp.lt.s32.totalorder %s1824_s21, %s1539_s18 }
  0x5d   : > { %p1536_p8 = pnand %p1534_p4, %p1520_p0  ;;  %p1542_p7 = scmp.lt.s32.totalorder %s1540_s12, %s1533_s14 }
  0x5f   : > { %p1537_p12 = pneg %p1536_p8  ;;  %p1543_p10 = por %p1542_p7, %p1541_p3 }
  0x61   : > { %p1544_p13 = pnand %p1543_p10, %p1537_p12 }
  0x63   : > { %1547 = shalt.err (!%p1544_p13)
}
  0x64   : > { %1406 = dma.hbm_to_vmem [thread:$0]  (!%p1826_p11), %s1822_s15, 128, %s1824_s21, %s380_s26  }
  0x65   : > { %p2075_p5 = scmp.ne.s32.totalorder %s2068_s29, 0 }
  0x66   : > { %s1858_s6 = sand.u32 (!%p2075_p5), 1, %s1610_s22   ;;  %p2076_p0 = scmp.ne.s32.totalorder (!%p2075_p5), %s2065_s27, 0 }
  0x67   : > { %399 = sbr.rel (%p2075_p5) target bundleno = 2340 (0x924), region = 68  ;;  %s1240_s13 = sshll.u32 (!%p2075_p5), %s1858_s6, 3 }
  0x68   : > { %s402_s19 = scalar_lea.sflag (!%p2075_p5), [#allocation3], %s1858_s6  ;;  %s1864_s14 = scalar_lea.vmem (!%p2075_p5), [#allocation2], %s1240_s13 }
  0x6e   : > { %1593 = dma.done.wait (%p2076_p0), %s402_s19, 128  }
  0x6f   : > { %1595 = vsyncadd (%p2076_p0), %s402_s19, 4294967168  ;;  %p2077_p11 = scmp.eq.s32.totalorder %s1713_s25, 0 }
  0x71   : > { %1597 = dma.done.wait (%p2077_p11), [#allocation6], 32   ;;  %p2078_p9 = pmov %p2077_p11 }
  0x72   : > { %v1623_v0 = vmov 0.0|0.0   ;;  %vm1624_vm0 = vmmov 0   ;;  %v1625_v1 = vmov 0.0   ;;  %v456_v2 = vld [vmem:[%s2044_s1] sm:$0xff]  ;;  %v457_v3 = vld [vmem:[%s2044_s1 + $0x8] sm:$0xff]  ;;  %v458_v4 = vld [vmem:[%s2044_s1 + $0x10] sm:$0xff] }
  0x73   : > { %1599 = vsyncadd (%p2078_p9), [#allocation6], 4294967264  ;;  %1354 = vmatprep.subr.bf16.mxu0 %v1623_v0  ;;  %1297 = vmatprep.mubr.msk.f32.mxu0 %vm1624_vm0, %v1625_v1  ;;  %v1355_v5 = vpack.c.bf16 %v457_v3, %v456_v2  ;;  %v459_v6 = vld [vmem:[%s2044_s1 + $0x18] sm:$0xff]  ;;  %v541_v7 = vld [vmem:[%s2046_s3] sm:$0xff]  ;;  %vm467_vm1 = vcmask 261120   ;;  %vm738_vm2 = vcmask 60416  }
  0x74   : > { %1360 = vmatprep.subr.bf16.mxu1 %v1623_v0  ;;  %1308 = vmatprep.mubr.msk.f32.mxu1 %vm1624_vm0, %v1625_v1  ;;  %v542_v8 = vld [vmem:[%s2046_s3 + $0x8] sm:$0xff]  ;;  %v1358_v9 = vpack.c.bf16 %v459_v6, %v458_v4  ;;  %v543_v11 = vld [vmem:[%s2046_s3 + $0x10] sm:$0xff]  ;;  %v544_v12 = vld [vmem:[%s2046_s3 + $0x18] sm:$0xff]  ;;  %vm750_vm3 = vcmask 64512   ;;  %vm825_vm4 = vcmask 257024   ;;  %s1257_s26 = sshll.u32 %s1713_s25, 7 }
  0x75   : > { %1356 = vmatpush3.bf16.msra.mxu0 %v1355_v5  ;;  %v1361_v10 = vpack.c.bf16 %v542_v8, %v541_v7  ;;  %v622_v13 = vld [vmem:[%s2048_s5] sm:$0xff]  ;;  %v623_v14 = vld [vmem:[%s2048_s5 + $0x8] sm:$0xff]  ;;  %v1364_v15 = vpack.c.bf16 %v544_v12, %v543_v11  ;;  %v624_v18 = vld [vmem:[%s2048_s5 + $0x10] sm:$0xff]  ;;  %s453_s28 = scalar_lea.vmem [#allocation8], %s1240_s13  ;;  %s1130_s25 = scalar_lea.sflag [#allocation4], %s1858_s6 }
  0x76   : > { %1357 = vmatprep.subr.bf16.mxu0 %v1623_v0  ;;  %v455_v16 = vld [vmem:[%s1864_s14] sm:$0xff]  ;;  %v1367_v17 = vpack.c.bf16 %v623_v14, %v622_v13  ;;  %v625_v19 = vld [vmem:[%s2048_s5 + $0x18] sm:$0xff]  ;;  %v1248_v25 = vld [vmem:[#allocation5] ss:$0 sm:$0xff]  ;;  %s1143_s18 = sshll.u32 %s453_s28, 4  ;;  %s2079_s14 = sld [smem:[#allocation15_spill]]  ;;  %s2000_s18 = int_to_ptr.vmem [resolvable:$true] %s1143_s18 }
  0x77   : > { %1362 = vmatpush3.bf16.msra.mxu1 %v1361_v10  ;;  %v1370_v20 = vpack.c.bf16 %v625_v19, %v624_v18  ;;  %v1244_v21 = vld [vmem:[%s2045_s2] ss:$0 sm:$0xff]  ;;  %v835_v42 = vld [vmem:[%s2050_s7 + $0x8] sm:$0xff]  ;;  %v836_v44 = vld [vmem:[%s2050_s7 + $0x10] sm:$0xff]  ;;  %s1548_s29 = scalar_lea.vmem %s2000_s18, 128  ;;  %s1626_s13 = smov [#allocation8]  }
  0x78   : > { %1363 = vmatprep.subr.bf16.mxu1 %v1623_v0  ;;  %v834_v41 = vld [vmem:[%s2050_s7] sm:$0xff]  ;;  %v837_v45 = vld [vmem:[%s2050_s7 + $0x18] sm:$0xff]  ;;  %v1251_v61 = vld [vmem:[#allocation7] ss:$0 sm:$0xff]  ;;  %p1549_p2 = scmp.ne.s32.totalorder %s2000_s18, %s1548_s29  ;;  %s1552_s15 = sshll.u32 %s1626_s13, 4  ;;  %s1553_s15 = int_to_ptr.vmem [resolvable:$false] %s1552_s15 }
  0x79   : > { %1359 = vmatpush3.bf16.msra.mxu0 %v1358_v9  ;;  %v1373_v43 = vpack.c.bf16 %v835_v42, %v834_v41  ;;  %v1376_v46 = vpack.c.bf16 %v837_v45, %v836_v44  ;;  %v454_v47 = vld [vmem:[%s2054_s11] sm:$0xf]  ;;  %v1044_v13 = vld [vmem:[%s2052_s9 + $0x8] sm:$0xff]  ;;  %s1554_s21 = scalar_lea.vmem %s1553_s15, 256  ;;  %p1555_p8 = scmp.lt.s32.totalorder %s2000_s18, %s1553_s15 }
  0x7a   : > { %1366 = vmatprep.subr.bf16.mxu0 %v1623_v0  ;;  %v1246_v56 = vld [vmem:[%s2047_s4] ss:$0 sm:$0xff]  ;;  %p1550_p1 = pnand %p1549_p2, %p1812_p6  ;;  %p1556_p12 = scmp.lt.s32.totalorder %s1554_s21, %s1548_s29 }
  0x7b   : > { %1365 = vmatpush3.bf16.msra.mxu1 %v1364_v15  ;;  %v1043_v12 = vld [vmem:[%s2052_s9] sm:$0xff]  ;;  %v1045_v15 = vld [vmem:[%s2052_s9 + $0x10] sm:$0xff] }
  0x7c   : > { %1298 = vmatmul.mubr.msk.f32.vlgmr.msra.gmra.mrb[0].mxu0 %vm467_vm1, %v455_v16  ;;  %1322 = vmatprep.subr.mxu1 %v1625_v1  ;;  %v1379_v14 = vpack.c.bf16 %v1044_v13, %v1043_v12  ;;  %s1998_s27 = scalar_lea.hbm %s2079_s14, %s1257_s26  ;;  %p1551_p4 = pneg %p1550_p1 }
  0x7d   : > { %1368 = vmatpush3.bf16.msra.mxu0 %v1367_v17  ;;  %1319 = vmatprep.mubr.msk.f32.mxu0 %vm1624_vm0, %v1625_v1  ;;  %p1557_p3 = por %p1556_p12, %p1555_p8 }
  0x7e   : > { %1369 = vmatprep.subr.bf16.mxu0 %v1623_v0  ;;  %1309 = vmatmul.mubr.msk.f32.vlgmr.msra.gmra.mrb[0].mxu1 %vm467_vm1, %v455_v16  ;;  %v1046_v16 = vld [vmem:[%s2052_s9 + $0x18] sm:$0xff] }
  0x7f   : > { %1324 = vmatprep.mubr.msk.f32.mxu1 %vm1624_vm0, %v1625_v1  ;;  %v1382_v17 = vpack.c.bf16 %v1046_v16, %v1045_v15  ;;  %p1558_p7 = pnand %p1557_p3, %p1551_p4 }
  0x81   : > { %1371 = vmatpush3.bf16.msra.mxu0 %v1370_v20 }
  0x82   : > { %1378 = vmatprep.subr.bf16.mxu0 %v1623_v0 }
 0x14f   : > { %v537_v22 = vpop.f32.mrb[0].mxu0 }
 0x150   : > { %v1932_v23 = vadd.f32 %v1244_v21, %v537_v22  ;;  %v1299_v24 = vpop.f32.mrb[1].mxu0 }
 0x151   : > { %v618_v36 = vpop.f32.mrb[0].mxu1 }
 0x152   : > { %1320 = vmatmul.mubr.msk.f32.vlgmr.msra.gmra.mrb[2].mxu0 %vm467_vm1, %v1932_v23  ;;  %1323 = vmatpush3.msra.mxu1 %v1932_v23  ;;  %v1310_v37 = vpop.f32.mrb[1].mxu1  ;;  %v619_v58 = vadd.f32 %v1246_v56, %v618_v36 }
 0x153   : > { %1372 = vmatprep.subr.bf16.mxu1 %v1623_v0  ;;  %1351 = vmatprep.mubr.msk.f32.mxu0 %vm1624_vm0, %v1625_v1 }
 0x154   : > { %1380 = vmatpush3.bf16.msra.mxu0 %v1379_v14 }
 0x155   : > { %1381 = vmatprep.subr.bf16.mxu0 %v1623_v0 }
 0x158   : > { %1383 = vmatpush3.bf16.msra.mxu0 %v1382_v17 }
 0x225   : > { %v702_v26 = vpop.f32.mrb[2].mxu0 }
 0x226   : > { %v1321_v27 = vpop.f32.mrb[3].mxu0  ;;  %v703_v28 = vadd.f32 %v1248_v25, %v702_v26 }
 0x228   : > { %706 = vxpose.xlu0.b32.start.end [1/1] (short) (narrow) %v703_v28, 8 }
 0x2a8   : > { %v722_v29 = vpop.trf.xlu0 }
 0x2a9   : > { %v739_v30 = vsel %vm738_vm2, %v722_v29, -inf }
 0x2aa   : > { %740 = vmax.xlane.f32.xlu0 %v739_v30 }
 0x337   : > { %v741_v31 = vpop.xlane.xlu0 %740 }
 0x338   : > { %v742_v32 = vsub.f32 %v722_v29, %v741_v31  ;;  %v1254_v29 = vld [vmem:[%s2053_s10] ss:$0 sm:$0xff] }
 0x33a   : > { %v743_v33 = vmul.f32 1.442695, %v742_v32 }
 0x33c   : > { %1454 = vpow2.f32 %v743_v33 }
 0x346   : > { %v1455_v34 = vpop.eup %1454 }
 0x347   : > { %v745_v35 = vsel %vm738_vm2, %v1455_v34, 0.0 }
 0x348   : > { %746 = vadd.xlane.f32.xlu1 %v745_v35 }
 0x3d5   : > { %v747_v38 = vpop.xlane.xlu1 %746 }
 0x3d6   : > { %1456 = vrcp.f32 %v747_v38 }
 0x3e0   : > { %v1457_v39 = vpop.eup %1456 }
 0x3e1   : > { %v749_v40 = vmul.f32 %v1457_v39, %v1455_v34 }
 0x3e3   : > { %1325 = vmatmul.mubr.msk.f32.vlgmr.msra.gmra.mrb[2].mxu1 %vm750_vm3, %v749_v40 }
 0x3e4   : > { %1335 = vmatprep.mubr.msk.f32.mxu1 %vm1624_vm0, %v1625_v1  ;;  %1374 = vmatpush3.bf16.msra.mxu1 %v1373_v43 }
 0x3e5   : > { %1375 = vmatprep.subr.bf16.mxu1 %v1623_v0 }
 0x3e8   : > { %1377 = vmatpush3.bf16.msra.mxu1 %v1376_v46 }
 0x3e9   : > { %1338 = vmatprep.subr.mxu1 %v1625_v1 }
 0x4b6   : > { %v820_v48 = vpop.f32.mrb[2].mxu1 }
 0x4b7   : > { %v824_v49 = vmul.f32 %v820_v48, %v454_v47  ;;  %v1326_v50 = vpop.f32.mrb[3].mxu1 }
 0x4b9   : > { %v826_v51 = vsel %vm825_vm4, %v824_v49, 0.0 }
 0x4ba   : > { %v827_v52 = vrot.slane %v826_v51, 4 }
 0x4bc   : > { %v828_v53 = vadd.f32 %v827_v52, %v826_v51 }
 0x4be   : > { %v829_v54 = vrot.slane %v828_v53, 2 }
 0x4c0   : > { %v830_v55 = vadd.f32 %v829_v54, %v828_v53 }
 0x4c2   : > { %v831_v57 = vrot.slane %v830_v55, 1 }
 0x4c4   : > { %v832_v59 = vadd.f32 %v831_v57, %v830_v55 }
 0x4c6   : > { %v833_v60 = vmul.f32 %v832_v59, %v619_v58 }
 0x4c8   : > { %1336 = vmatmul.mubr.msk.f32.vlgmr.msra.gmra.mrb[4].mxu1 %vm467_vm1, %v833_v60 }
 0x4c9   : > { %1339 = vmatpush3.msra.mxu1 %v833_v60  ;;  %1340 = vmatprep.mubr.msk.f32.mxu1 %vm1624_vm0, %v1625_v1 }
 0x59b   : > { %v914_v62 = vpop.f32.mrb[4].mxu1 }
 0x59c   : > { %v915_v63 = vadd.f32 %v1251_v61, %v914_v62  ;;  %v1337_v2 = vpop.f32.mrb[5].mxu1 }
 0x59e   : > { %918 = vxpose.xlu1.b32.start.end [1/1] (short) (narrow) %v915_v63, 8 }
 0x61e   : > { %v934_v3 = vpop.trf.xlu1 }
 0x61f   : > { %v950_v4 = vsel %vm738_vm2, %v934_v3, -inf }
 0x620   : > { %951 = vmax.xlane.f32.xlu0 %v950_v4 }
 0x6ad   : > { %v952_v5 = vpop.xlane.xlu0 %951 }
 0x6ae   : > { %v953_v6 = vsub.f32 %v934_v3, %v952_v5 }
 0x6b0   : > { %v954_v7 = vmul.f32 1.442695, %v953_v6 }
 0x6b2   : > { %1458 = vpow2.f32 %v954_v7 }
 0x6bc   : > { %v1459_v8 = vpop.eup %1458 }
 0x6bd   : > { %v956_v9 = vsel %vm738_vm2, %v1459_v8, 0.0 }
 0x6be   : > { %957 = vadd.xlane.f32.xlu0 %v956_v9 }
 0x74b   : > { %v958_v10 = vpop.xlane.xlu0 %957 }
 0x74c   : > { %1460 = vrcp.f32 %v958_v10 }
 0x756   : > { %v1461_v1 = vpop.eup %1460 }
 0x757   : > { %v960_v11 = vmul.f32 %v1461_v1, %v1459_v8 }
 0x759   : > { %1341 = vmatmul.mubr.msk.f32.vlgmr.msra.gmra.mrb[6].mxu1 %vm750_vm3, %v960_v11 }
 0x82c   : > { %v1030_v18 = vpop.f32.mrb[6].mxu1 }
 0x82d   : > { %v1034_v19 = vmul.f32 %v1030_v18, %v454_v47  ;;  %v1342_v20 = vpop.f32.mrb[7].mxu1 }
 0x82f   : > { %v1035_v21 = vsel %vm825_vm4, %v1034_v19, 0.0 }
 0x830   : > { %v1036_v22 = vrot.slane %v1035_v21, 4 }
 0x832   : > { %v1037_v24 = vadd.f32 %v1036_v22, %v1035_v21 }
 0x834   : > { %v1038_v0 = vrot.slane %v1037_v24, 2 }
 0x836   : > { %v1039_v25 = vadd.f32 %v1038_v0, %v1037_v24 }
 0x838   : > { %v1040_v26 = vrot.slane %v1039_v25, 1 }
 0x83a   : > { %v1041_v27 = vadd.f32 %v1040_v26, %v1039_v25 }
 0x83c   : > { %v1042_v28 = vmul.f32 %v1041_v27, %v1932_v23 }
 0x83e   : > { %1352 = vmatmul.mubr.msk.f32.vlgmr.msra.gmra.mrb[4].mxu0 %vm467_vm1, %v1042_v28 }
 0x911   : > { %v1123_v30 = vpop.f32.mrb[4].mxu0 }
 0x912   : > { %v1124_v31 = vadd.f32 %v1254_v29, %v1123_v30  ;;  %v1353_v32 = vpop.f32.mrb[5].mxu0 }
 0x914   : > { %v1127_v33 = vadd.f32 %v1124_v31, %v1932_v23 }
 0x916   : > { %1128 = vst.msk [vmem:[%s453_s28] sm:$0xff] %vm467_vm1, %v1127_v33 }
 0x917   : > { %1561 = shalt.err (!%p1558_p7)
}
 0x918   : > { %s1562_s6 = scalar_lea.hbm %s1998_s27, 128  ;;  %s1566_s28 = scalar_lea.hbm %s2079_s14, 256 }
 0x919   : > { %p1563_p10 = scmp.ne.s32.totalorder %s1998_s27, %s1562_s6  ;;  %p1567_p0 = scmp.lt.u32.totalorder %s1998_s27, %s2079_s14 }
 0x91a   : > { %p1568_p11 = scmp.lt.u32.totalorder %s1566_s28, %s1562_s6  ;;  %p1570_p2 = scmp.lt.u32.totalorder %s1562_s6, %s1998_s27 }
 0x91b   : > { %p1564_p13 = pnand %p1563_p10, %p1812_p6 }
 0x91c   : > { %p1569_p9 = por %p1568_p11, %p1567_p0 }
 0x91d   : > { %p1565_p5 = pneg %p1564_p13 }
 0x91e   : > { %p1571_p1 = por %p1570_p2, %p1569_p9 }
 0x920   : > { %p1572_p4 = pnand %p1571_p1, %p1565_p5 }
 0x922   : > { %1575 = shalt.err (!%p1572_p4)
}
 0x923   : > { %1394 = dma.vmem_to_hbm [thread:$0]  (%p1812_p6), %s2000_s18, 128, %s1998_s27, %s1130_s25  }
 0x924 PF: > { %s2080_s29 = sld [smem:[#allocation12_spill]]  ;;  %s2081_s13 = sld [smem:[#allocation13_spill]] }
 0x925   : > { %p2083_p12 = scmp.ge.s32.totalorder %s1618_s24, 2 }
 0x92a   : > { %s1155_s15 = sand.u32 1, %s2080_s29   ;;  %p2082_p8 = scmp.ne.s32.totalorder %s2081_s13, 0 }
 0x92b   : > { %s1156_s21 = scalar_lea.sflag [#allocation4], %s1155_s15 }
 0x92c   : > { %p1408_p3 = pnand %p2083_p12, %p2082_p8 }
 0x92e   : > { %1601 = dma.done.wait (!%p1408_p3), %s1156_s21, 128  }
 0x92f   : > { %1603 = vsyncadd (!%p1408_p3), %s1156_s21, 4294967168  ;;  %p26_p7 = scmp.ge.s32.totalorder %s1748_s17, 4   ;;  %s2084_s21 = smov %s1610_s22 }
 0x930   : > { %s2085_s22 = smov %s1614_s23  ;;  %s2086_s23 = smov %s1808_s16 }
 0x931   : > { %s2087_s24 = smov %s1748_s17  ;;  %28 = sbr.rel (!%p26_p7) target bundleno = 9 (0x9), region = 121 }
 0x938   :  { %1161 = vsyncpa [#allocation3], 1 }
 0x939   :  { %1163 = vsyncpa [#allocation3 + $0x1], 1 }
 0x93a   :  { %1164 = vsyncpa [#allocation6], 1 }
 0x93b   :  { %1165 = vsyncpa [#allocation4], 1 }
 0x93c   :  { %1167 = vsyncpa [#allocation4 + $0x1], 1 }

</bundles_post_ra>
